<compile_context>
chip_gen: v5e
topology: v5e:2x2
jax: 0.10.0
libtpu: 0.0.40
codegen_flags: <defaults>
</compile_context>

<pallas_src>
import functools

import jax
import jax.numpy as jnp
from jax import lax
from jax.experimental import pallas as pl
from jax.experimental.pallas import tpu as pltpu


# Contract the leading axis of both operands (x tiles are (C, T): channel first).
_DN_LEAD = (((0,), (0,)), ((), ()))
# Contract the trailing (feature) axis of both operands (Q (TQ,Co) vs K (TK,Co)).
_DN_FEAT = (((1,), (1,)), ((), ()))


def _mhsa_flash_kernel(xq_ref, xk_ref, wq_ref, bq_ref, wkv_ref, bkv_ref,
                       wp_ref, gamma_ref, out_ref,
                       q_ref, m_ref, l_ref, acc_ref,
                       *, n_heads: int, head_dim: int, residual: bool):
    """Grid point = (batch b, query tile qi, key tile ki); ki is innermost.

    xq_ref   : (1, C, TQ)     query-side x tile (NCL layout, no transpose)
    xk_ref   : (1, C, TK)     key/value-side x tile
    wq_ref   : (C, H*Co)      fused per-head query weights
    bq_ref   : (1, H*Co)
    wkv_ref  : (C, 2*H*Co)    fused key|value weights
    bkv_ref  : (1, 2*H*Co)
    wp_ref   : (C, Co)        residual projection (bias-free, shared by heads)
    gamma_ref: (H,) in SMEM   per-head residual gate
    out_ref  : (1, H*Co, TQ)  output tile, already in PyTorch (B, H*Co, N) layout
    q_ref    : (TQ, H*Co)     cached Q for the current query tile
    m_ref    : (H, 1, TQ)     online-softmax running max
    l_ref    : (H, 1, TQ)     online-softmax running denominator
    acc_ref  : (H, Co, TQ)    un-normalized output accumulator
    """
    H, Co = n_heads, head_dim
    HCo = H * Co
    ki = pl.program_id(2)
    cdt = wq_ref.dtype  # MXU compute dtype (f32 default, optionally bf16)

    @pl.when(ki == 0)
    def _init():
        # Q projection once per (b, q-tile): a single wide matmul over all heads.
        x_q = xq_ref[0].astype(cdt)                                     # (C, TQ)
        q = lax.dot_general(x_q, wq_ref[...], _DN_LEAD,
                            preferred_element_type=jnp.float32)         # (TQ, HCo)
        q_ref[...] = (q + bq_ref[...]).astype(cdt)
        m_ref[...] = jnp.full_like(m_ref, -jnp.inf)
        l_ref[...] = jnp.zeros_like(l_ref)
        acc_ref[...] = jnp.zeros_like(acc_ref)

    # K/V projection for this key tile: one fused (TK, 2*H*Co) matmul.
    x_k = xk_ref[0].astype(cdt)                                         # (C, TK)
    kv = lax.dot_general(x_k, wkv_ref[...], _DN_LEAD,
                         preferred_element_type=jnp.float32)            # (TK, 2*HCo)
    kv = (kv + bkv_ref[...]).astype(cdt)
    q_slab = q_ref[...]                                                 # (TQ, HCo)

    # Per-head online softmax (H is small -> static unroll).
    for h in range(H):
        q_h = q_slab[:, h * Co:(h + 1) * Co]                            # (TQ, Co)
        k_h = kv[:, h * Co:(h + 1) * Co]                                # (TK, Co)
        v_h = kv[:, HCo + h * Co:HCo + (h + 1) * Co]                    # (TK, Co)

        # energy^T for this head: s_t[j, i] = <K_j, Q_i>  (no 1/sqrt(d) scaling,
        # matching the PyTorch module).
        s_t = lax.dot_general(k_h, q_h, _DN_FEAT,
                              preferred_element_type=jnp.float32)       # (TK, TQ)

        m_prev = m_ref[h]                                               # (1, TQ)
        m_new = jnp.maximum(m_prev, jnp.max(s_t, axis=0, keepdims=True))
        alpha = jnp.exp(m_prev - m_new)                                 # (1, TQ)
        p_t = jnp.exp(s_t - m_new)                                      # (TK, TQ)
        l_ref[h] = alpha * l_ref[h] + jnp.sum(p_t, axis=0, keepdims=True)
        # out^T contribution: acc[c, i] += sum_j V[j, c] * p[j, i]
        acc_ref[h] = alpha * acc_ref[h] + lax.dot_general(
            v_h, p_t.astype(cdt), _DN_LEAD, preferred_element_type=jnp.float32)
        m_ref[h] = m_new

    @pl.when(ki == pl.num_programs(2) - 1)
    def _finalize():
        if residual:
            # Shared residual projection: once per (b, q-tile), not once per head.
            x_q = xq_ref[0].astype(cdt)
            yproj = lax.dot_general(wp_ref[...], x_q, _DN_LEAD,
                                    preferred_element_type=jnp.float32)  # (Co, TQ)
        parts = []
        for h in range(H):
            o_h = acc_ref[h] * pl.reciprocal(l_ref[h], approx=True)      # (Co, TQ)
            if residual:
                g = gamma_ref[h]                                          # SMEM scalar
                o_h = (g * o_h + yproj) * (1.0 / (1.0 + g))
            parts.append(o_h)
        slab = parts[0] if H == 1 else jnp.concatenate(parts, axis=0)    # (HCo, TQ)
        out_ref[0] = slab.astype(out_ref.dtype)


def _pick_tile(n: int, preferred: int) -> int:
    """Largest 128-multiple tile <= preferred that evenly divides n (else n)."""
    if n <= preferred:
        return n
    for t in range(preferred, 127, -128):
        if n % t == 0:
            return t
    # TODO(synk): n > preferred but not divisible by any 128-multiple tile --
    #             fall back to a single full-length tile (correct, less pipelined).
    return n


class MultiHeadSelfAttention1d:
    """JAX/Pallas port of moduleZoo MultiHeadSelfAttention1d (kernel_size=1)."""

    def __init__(self, in_channels, out_channels=None, n_heads=1, residual=True,
                 *, key, compute_dtype=jnp.float32):
        self.C = in_channels
        self.Co = in_channels if out_channels is None else out_channels
        self.H = n_heads
        self.residual = residual
        # Set compute_dtype=jnp.bfloat16 on v6e/v7x for full MXU rate.
        self.compute_dtype = compute_dtype

        C, Co, H = self.C, self.Co, self.H
        ks = jax.random.split(key, 8)

        def conv_w(k, cin, cout):
            # torch Conv1d weight (cout, cin, 1); stored transposed (cin, cout)
            # so the kernel contracts the channel axis of an NCL x tile directly.
            w = jax.random.normal(k, (cout, cin), jnp.float32)
            w = w * (1.0 / jnp.sqrt(jnp.float32(cin)))
            return jnp.transpose(w)

        def conv_b(k, cout):
            return (jax.random.normal(k, (cout,), jnp.float32) * 0.01).reshape(1, cout)

        # query/key/value convs: Conv1d(C, H*Co, 1, bias=True); heads fused.
        self.wq = conv_w(ks[0], C, H * Co).astype(compute_dtype)        # (C, H*Co)
        self.bq = conv_b(ks[1], H * Co)                                 # (1, H*Co)
        wk = conv_w(ks[2], C, H * Co)
        bk = conv_b(ks[3], H * Co)
        wv = conv_w(ks[4], C, H * Co)
        bv = conv_b(ks[5], H * Co)
        self.wkv = jnp.concatenate([wk, wv], axis=1).astype(compute_dtype)  # (C, 2*H*Co)
        self.bkv = jnp.concatenate([bk, bv], axis=1)                        # (1, 2*H*Co)
        # residual projection: Conv1d(C, Co, 1, bias=False), shared across heads.
        self.wp = conv_w(ks[6], C, Co).astype(compute_dtype)            # (C, Co)
        # gamma = rand(H,1,1,1) + 0.001 -> stored flat (H,) for SMEM.
        self.gamma = jax.random.uniform(ks[7], (H,), jnp.float32) + 0.001

    def __call__(self, x):
        # x: (B, C, N) -- PyTorch NCL layout, consumed as-is (no wrapper transpose).
        B, C, N = x.shape
        assert C == self.C
        H, Co = self.H, self.Co
        HCo = H * Co

        tq = _pick_tile(N, 256)
        tk = _pick_tile(N, 512)
        nq, nk = N // tq, N // tk

        xsz = jnp.dtype(x.dtype).itemsize
        wsz = jnp.dtype(self.compute_dtype).itemsize

        # VMEM budget: double-buffered blocks + weights + scratch + live values.
        vmem_est = (
            2 * C * (tq + tk) * xsz                  # x_q / x_k input blocks
            + 2 * C * (3 * HCo + Co) * wsz           # wq, wkv, wp
            + 2 * 3 * HCo * 4                        # biases
            + 2 * HCo * tq * xsz                     # output block
            + tq * HCo * wsz                         # cached-Q scratch
            + (2 * H * tq + H * Co * tq) * 4         # m / l / acc scratch
            + (2 * tk * HCo + 3 * tk * tq) * 4       # kv slab + s_t/p_t live values
        )
        # Cap at 64 MiB (v7x physical VMEM per TensorCore).
        vmem_limit = int(min(max(int(vmem_est * 1.5) + (2 << 20), 16 << 20), 64 << 20))

        flops = B * (2 * N * C * 3 * HCo                     # QKV projections
                     + (2 * N * C * Co if self.residual else 0)
                     + 4 * N * N * HCo)                      # QK^T and PV matmuls
        cost = pl.CostEstimate(
            flops=int(flops),
            transcendentals=int(B * H * N * N),
            bytes_accessed=int(B * C * N * xsz * (1 + nq)
                               + C * (3 * HCo + Co) * wsz
                               + B * HCo * N * xsz))

        kernel = functools.partial(_mhsa_flash_kernel, n_heads=H, head_dim=Co,
                                   residual=self.residual)

        out = pl.pallas_call(
            kernel,
            out_shape=jax.ShapeDtypeStruct((B, HCo, N), x.dtype),
            grid=(B, nq, nk),
            in_specs=[
                pl.BlockSpec((1, C, tq), lambda b, qi, ki: (b, 0, qi)),   # x (query side)
                pl.BlockSpec((1, C, tk), lambda b, qi, ki: (b, 0, ki)),   # x (key side)
                pl.BlockSpec((C, HCo), lambda b, qi, ki: (0, 0)),         # wq
                pl.BlockSpec((1, HCo), lambda b, qi, ki: (0, 0)),         # bq
                pl.BlockSpec((C, 2 * HCo), lambda b, qi, ki: (0, 0)),     # wkv
                pl.BlockSpec((1, 2 * HCo), lambda b, qi, ki: (0, 0)),     # bkv
                pl.BlockSpec((C, Co), lambda b, qi, ki: (0, 0)),          # wp
                pl.BlockSpec(memory_space=pltpu.MemorySpace.SMEM),        # gamma
            ],
            out_specs=pl.BlockSpec((1, HCo, tq), lambda b, qi, ki: (b, 0, qi)),
            scratch_shapes=[
                pltpu.VMEM((tq, HCo), self.compute_dtype),   # cached Q
                pltpu.VMEM((H, 1, tq), jnp.float32),         # running max
                pltpu.VMEM((H, 1, tq), jnp.float32),         # running denominator
                pltpu.VMEM((H, Co, tq), jnp.float32),        # output accumulator
            ],
            compiler_params=pltpu.CompilerParams(
                dimension_semantics=("parallel", "parallel", "arbitrary"),
                vmem_limit_bytes=vmem_limit),
            cost_estimate=cost,
        )(x, x, self.wq, self.bq, self.wkv, self.bkv, self.wp, self.gamma)

        if self.residual and H == 1:
            # PyTorch returns a 4D (1, B, Co, N) on this path (gamma (1,1,1,1)
            # broadcast, no squeeze when n_heads == 1) -- reproduced exactly.
            return out[None]
        # Heads concatenated along channels, head-major: (B, H*Co, N).
        return out


def _reference_forward(mod: MultiHeadSelfAttention1d, x):
    """Pure-JAX reference of the PyTorch forward (kernel_size=1)."""
    B, C, N = x.shape
    H, Co = mod.H, mod.Co
    HCo = H * Co
    wq = mod.wq.astype(jnp.float32)
    wk = mod.wkv[:, :HCo].astype(jnp.float32)
    wv = mod.wkv[:, HCo:].astype(jnp.float32)
    bq = mod.bq[0]
    bk = mod.bkv[0, :HCo]
    bv = mod.bkv[0, HCo:]
    q = jnp.einsum('co,bcn->bon', wq, x) + bq[:, None]          # (B, HCo, N)
    k = jnp.einsum('co,bcn->bon', wk, x) + bk[:, None]
    v = jnp.einsum('co,bcn->bon', wv, x) + bv[:, None]
    q = q.reshape(B, H, Co, N)
    k = k.reshape(B, H, Co, N)
    v = v.reshape(B, H, Co, N)
    energy = jnp.einsum('bhci,bhcj->bhij', q, k)                 # Q^T K (no scaling)
    attn = jax.nn.softmax(energy, axis=-1)
    out = jnp.einsum('bhcj,bhij->bhci', v, attn)                 # (B, H, Co, N)
    if mod.residual:
        yproj = jnp.einsum('co,bcn->bon', mod.wp.astype(jnp.float32), x)  # (B, Co, N)
        g = mod.gamma.reshape(1, H, 1, 1)
        out = (g * out + yproj[:, None]) / (1.0 + g)
        if H == 1:
            return jnp.transpose(out, (1, 0, 2, 3))              # (1, B, Co, N)
        return out.reshape(B, HCo, N)                            # head-major channels
    return out.reshape(B, HCo, N)


if __name__ == "__main__":
    key = jax.random.PRNGKey(0)
    k_x, k_params = jax.random.split(key)

    B, C, N = 2, 8, 16
    n_heads = 2
    x = jax.random.normal(k_x, (B, C, N), jnp.float32)

    mod = MultiHeadSelfAttention1d(in_channels=C, out_channels=None,
                                   n_heads=n_heads, residual=True,
                                   key=k_params)
    out = mod(x)
    jax.block_until_ready(out)

    assert out.shape == (B, n_heads * C, N), out.shape
    assert bool(jnp.all(jnp.isfinite(out)))

    ref = _reference_forward(mod, x)
    max_err = float(jnp.max(jnp.abs(out - ref)))
    # Loose tolerance: default-precision MXU passes + approx reciprocal, but far
    # below any semantic (layout / ordering) error.
    assert max_err < 1e-1, f"max abs err {max_err}"

    print("KERNEL_OK")
</pallas_src>

<mosaic_0001>
module attributes {stable_mosaic.version = 11 : i64} {
  func.func @_mhsa_flash_kernel(%arg0: i32, %arg1: i32, %arg2: i32, %arg3: memref<1x8x16xf32, #tpu.memory_space<vmem>>, %arg4: memref<1x8x16xf32, #tpu.memory_space<vmem>>, %arg5: memref<8x16xf32, #tpu.memory_space<vmem>>, %arg6: memref<1x16xf32, #tpu.memory_space<vmem>>, %arg7: memref<8x32xf32, #tpu.memory_space<vmem>>, %arg8: memref<1x32xf32, #tpu.memory_space<vmem>>, %arg9: memref<8x8xf32, #tpu.memory_space<vmem>>, %arg10: memref<2xf32, #tpu.memory_space<smem>>, %arg11: memref<1x16x16xf32, #tpu.memory_space<vmem>>, %arg12: memref<16x16xf32, #tpu.memory_space<vmem>>, %arg13: memref<2x1x16xf32, #tpu.memory_space<vmem>>, %arg14: memref<2x1x16xf32, #tpu.memory_space<vmem>>, %arg15: memref<2x8x16xf32, #tpu.memory_space<vmem>>) attributes {dimension_semantics = [#tpu.dimension_semantics<parallel>, #tpu.dimension_semantics<parallel>, #tpu.dimension_semantics<arbitrary>], iteration_bounds = array<i64: 2, 1, 1>, scalar_prefetch = 0 : i64, scratch_operands = 4 : i64, tpu.core_type = #tpu.core_type<tc>, window_params = [{transform_indices = @transform_0, window_bounds = array<i64: 1, 8, 16>}, {transform_indices = @transform_1, window_bounds = array<i64: 1, 8, 16>}, {pipeline_mode = #tpu.pipeline_mode<synchronous>, transform_indices = @transform_2, window_bounds = array<i64: 8, 16>}, {pipeline_mode = #tpu.pipeline_mode<synchronous>, transform_indices = @transform_3, window_bounds = array<i64: 1, 16>}, {pipeline_mode = #tpu.pipeline_mode<synchronous>, transform_indices = @transform_4, window_bounds = array<i64: 8, 32>}, {pipeline_mode = #tpu.pipeline_mode<synchronous>, transform_indices = @transform_5, window_bounds = array<i64: 1, 32>}, {pipeline_mode = #tpu.pipeline_mode<synchronous>, transform_indices = @transform_6, window_bounds = array<i64: 8, 8>}, {transform_indices = @transform_7, window_bounds = array<i64: 2>}, {transform_indices = @transform_8, window_bounds = array<i64: 1, 16, 16>}]} {
    %c0_i32 = arith.constant 0 : i32
    %0 = arith.cmpi eq, %arg2, %c0_i32 : i32
    %1 = arith.extui %0 : i1 to i32
    %c0_i32_0 = arith.constant 0 : i32
    %2 = arith.cmpi ne, %1, %c0_i32_0 : i32
    scf.if %2 {
      %c0_54 = arith.constant 0 : index
      %c0_55 = arith.constant 0 : index
      %c0_56 = arith.constant 0 : index
      %84 = vector.load %arg3[%c0_54, %c0_55, %c0_56] : memref<1x8x16xf32, #tpu.memory_space<vmem>>, vector<1x8x16xf32>
      %85 = vector.shape_cast %84 : vector<1x8x16xf32> to vector<8x16xf32>
      %c0_57 = arith.constant 0 : index
      %c0_58 = arith.constant 0 : index
      %86 = vector.load %arg5[%c0_57, %c0_58] : memref<8x16xf32, #tpu.memory_space<vmem>>, vector<8x16xf32>
      %cst_59 = arith.constant dense<0.000000e+00> : vector<16x16xf32>
      %87 = tpu.matmul %85, %86, %cst_59 {dimension_numbers = #tpu.dot_dimension_numbers<[0], [0], [1], [1], [0, 1, 1, 1], [], []>} : vector<8x16xf32>, vector<8x16xf32>, vector<16x16xf32> -> vector<16x16xf32>
      %c0_60 = arith.constant 0 : index
      %c0_61 = arith.constant 0 : index
      %88 = vector.load %arg6[%c0_60, %c0_61] : memref<1x16xf32, #tpu.memory_space<vmem>>, vector<1x16xf32>
      %89 = vector.broadcast %88 : vector<1x16xf32> to vector<16x16xf32>
      %90 = arith.addf %87, %89 : vector<16x16xf32>
      %c0_62 = arith.constant 0 : index
      %c0_63 = arith.constant 0 : index
      %91 = vector.load %arg12[%c0_62, %c0_63] : memref<16x16xf32, #tpu.memory_space<vmem>>, vector<16x16xf32>
      tpu.vector_store %arg12[%c0_62, %c0_63], %90 {strides = array<i32>} : memref<16x16xf32, #tpu.memory_space<vmem>>, vector<16x16xf32>,
      %cst_64 = arith.constant 0xFF800000 : f32
      %92 = vector.broadcast %cst_64 : f32 to vector<2x1x16xf32>
      %c0_65 = arith.constant 0 : index
      %c0_66 = arith.constant 0 : index
      %c0_67 = arith.constant 0 : index
      %93 = vector.load %arg13[%c0_65, %c0_66, %c0_67] : memref<2x1x16xf32, #tpu.memory_space<vmem>>, vector<2x1x16xf32>
      tpu.vector_store %arg13[%c0_65, %c0_66, %c0_67], %92 {strides = array<i32>} : memref<2x1x16xf32, #tpu.memory_space<vmem>>, vector<2x1x16xf32>,
      %cst_68 = arith.constant 0.000000e+00 : f32
      %94 = vector.broadcast %cst_68 : f32 to vector<2x1x16xf32>
      %c0_69 = arith.constant 0 : index
      %c0_70 = arith.constant 0 : index
      %c0_71 = arith.constant 0 : index
      %95 = vector.load %arg14[%c0_69, %c0_70, %c0_71] : memref<2x1x16xf32, #tpu.memory_space<vmem>>, vector<2x1x16xf32>
      tpu.vector_store %arg14[%c0_69, %c0_70, %c0_71], %94 {strides = array<i32>} : memref<2x1x16xf32, #tpu.memory_space<vmem>>, vector<2x1x16xf32>,
      %cst_72 = arith.constant 0.000000e+00 : f32
      %96 = vector.broadcast %cst_72 : f32 to vector<2x8x16xf32>
      %c0_73 = arith.constant 0 : index
      %c0_74 = arith.constant 0 : index
      %c0_75 = arith.constant 0 : index
      %97 = vector.load %arg15[%c0_73, %c0_74, %c0_75] : memref<2x8x16xf32, #tpu.memory_space<vmem>>, vector<2x8x16xf32>
      tpu.vector_store %arg15[%c0_73, %c0_74, %c0_75], %96 {strides = array<i32>} : memref<2x8x16xf32, #tpu.memory_space<vmem>>, vector<2x8x16xf32>,
    } else {
    }
    %c0 = arith.constant 0 : index
    %c0_1 = arith.constant 0 : index
    %c0_2 = arith.constant 0 : index
    %3 = vector.load %arg4[%c0, %c0_1, %c0_2] : memref<1x8x16xf32, #tpu.memory_space<vmem>>, vector<1x8x16xf32>
    %4 = vector.shape_cast %3 : vector<1x8x16xf32> to vector<8x16xf32>
    %c0_3 = arith.constant 0 : index
    %c0_4 = arith.constant 0 : index
    %5 = vector.load %arg7[%c0_3, %c0_4] : memref<8x32xf32, #tpu.memory_space<vmem>>, vector<8x32xf32>
    %cst = arith.constant dense<0.000000e+00> : vector<16x32xf32>
    %6 = tpu.matmul %4, %5, %cst {dimension_numbers = #tpu.dot_dimension_numbers<[0], [0], [1], [1], [0, 1, 1, 1], [], []>} : vector<8x16xf32>, vector<8x32xf32>, vector<16x32xf32> -> vector<16x32xf32>
    %c0_5 = arith.constant 0 : index
    %c0_6 = arith.constant 0 : index
    %7 = vector.load %arg8[%c0_5, %c0_6] : memref<1x32xf32, #tpu.memory_space<vmem>>, vector<1x32xf32>
    %8 = vector.broadcast %7 : vector<1x32xf32> to vector<16x32xf32>
    %9 = arith.addf %6, %8 : vector<16x32xf32>
    %c0_7 = arith.constant 0 : index
    %c0_8 = arith.constant 0 : index
    %10 = vector.load %arg12[%c0_7, %c0_8] : memref<16x16xf32, #tpu.memory_space<vmem>>, vector<16x16xf32>
    %11 = vector.extract_strided_slice %10 {offsets = [0, 0], sizes = [16, 8], strides = [1, 1]} : vector<16x16xf32> to vector<16x8xf32>
    %12 = vector.extract_strided_slice %9 {offsets = [0, 0], sizes = [16, 8], strides = [1, 1]} : vector<16x32xf32> to vector<16x8xf32>
    %13 = vector.extract_strided_slice %9 {offsets = [0, 16], sizes = [16, 8], strides = [1, 1]} : vector<16x32xf32> to vector<16x8xf32>
    %cst_9 = arith.constant dense<0.000000e+00> : vector<16x16xf32>
    %14 = tpu.matmul %12, %11, %cst_9 {dimension_numbers = #tpu.dot_dimension_numbers<[1], [1], [0], [0], [0, 0, 1, 0], [], []>} : vector<16x8xf32>, vector<16x8xf32>, vector<16x16xf32> -> vector<16x16xf32>
    %c0_10 = arith.constant 0 : index
    %c0_11 = arith.constant 0 : index
    %c0_12 = arith.constant 0 : index
    %15 = vector.load %arg13[%c0_10, %c0_11, %c0_12] : memref<2x1x16xf32, #tpu.memory_space<vmem>>, vector<1x1x16xf32>
    %16 = vector.shape_cast %15 : vector<1x1x16xf32> to vector<1x16xf32>
    %cst_13 = arith.constant dense<0xFF800000> : vector<16xf32>
    %17 = vector.multi_reduction <maximumf>, %14, %cst_13 [0] : vector<16x16xf32> to vector<16xf32>
    %18 = vector.shape_cast %17 : vector<16xf32> to vector<1x16xf32>
    %19 = arith.maximumf %16, %18 : vector<1x16xf32>
    %20 = arith.subf %16, %19 : vector<1x16xf32>
    %21 = math.exp %20 : vector<1x16xf32>
    %22 = vector.broadcast %19 : vector<1x16xf32> to vector<16x16xf32>
    %23 = arith.subf %14, %22 : vector<16x16xf32>
    %24 = math.exp %23 : vector<16x16xf32>
    %c0_14 = arith.constant 0 : index
    %c0_15 = arith.constant 0 : index
    %c0_16 = arith.constant 0 : index
    %25 = vector.load %arg14[%c0_14, %c0_15, %c0_16] : memref<2x1x16xf32, #tpu.memory_space<vmem>>, vector<1x1x16xf32>
    %26 = vector.shape_cast %25 : vector<1x1x16xf32> to vector<1x16xf32>
    %27 = arith.mulf %21, %26 : vector<1x16xf32>
    %cst_17 = arith.constant dense<0.000000e+00> : vector<16xf32>
    %28 = vector.multi_reduction <add>, %24, %cst_17 [0] : vector<16x16xf32> to vector<16xf32>
    %29 = vector.shape_cast %28 : vector<16xf32> to vector<1x16xf32>
    %30 = arith.addf %27, %29 : vector<1x16xf32>
    %c0_18 = arith.constant 0 : index
    %c0_19 = arith.constant 0 : index
    %c0_20 = arith.constant 0 : index
    %31 = vector.load %arg14[%c0_18, %c0_19, %c0_20] : memref<2x1x16xf32, #tpu.memory_space<vmem>>, vector<1x1x16xf32>
    %32 = vector.shape_cast %31 : vector<1x1x16xf32> to vector<1x16xf32>
    %33 = vector.shape_cast %30 : vector<1x16xf32> to vector<1x1x16xf32>
    tpu.vector_store %arg14[%c0_18, %c0_19, %c0_20], %33 {strides = array<i32>} : memref<2x1x16xf32, #tpu.memory_space<vmem>>, vector<1x1x16xf32>,
    %c0_21 = arith.constant 0 : index
    %c0_22 = arith.constant 0 : index
    %c0_23 = arith.constant 0 : index
    %34 = vector.load %arg15[%c0_21, %c0_22, %c0_23] : memref<2x8x16xf32, #tpu.memory_space<vmem>>, vector<1x8x16xf32>
    %35 = vector.shape_cast %34 : vector<1x8x16xf32> to vector<8x16xf32>
    %36 = vector.broadcast %21 : vector<1x16xf32> to vector<8x16xf32>
    %37 = arith.mulf %36, %35 : vector<8x16xf32>
    %cst_24 = arith.constant dense<0.000000e+00> : vector<8x16xf32>
    %38 = tpu.matmul %13, %24, %cst_24 {dimension_numbers = #tpu.dot_dimension_numbers<[0], [0], [1], [1], [0, 1, 1, 1], [], []>} : vector<16x8xf32>, vector<16x16xf32>, vector<8x16xf32> -> vector<8x16xf32>
    %39 = arith.addf %37, %38 : vector<8x16xf32>
    %c0_25 = arith.constant 0 : index
    %c0_26 = arith.constant 0 : index
    %c0_27 = arith.constant 0 : index
    %40 = vector.load %arg15[%c0_25, %c0_26, %c0_27] : memref<2x8x16xf32, #tpu.memory_space<vmem>>, vector<1x8x16xf32>
    %41 = vector.shape_cast %40 : vector<1x8x16xf32> to vector<8x16xf32>
    %42 = vector.shape_cast %39 : vector<8x16xf32> to vector<1x8x16xf32>
    tpu.vector_store %arg15[%c0_25, %c0_26, %c0_27], %42 {strides = array<i32>} : memref<2x8x16xf32, #tpu.memory_space<vmem>>, vector<1x8x16xf32>,
    %c0_28 = arith.constant 0 : index
    %c0_29 = arith.constant 0 : index
    %c0_30 = arith.constant 0 : index
    %43 = vector.load %arg13[%c0_28, %c0_29, %c0_30] : memref<2x1x16xf32, #tpu.memory_space<vmem>>, vector<1x1x16xf32>
    %44 = vector.shape_cast %43 : vector<1x1x16xf32> to vector<1x16xf32>
    %45 = vector.shape_cast %19 : vector<1x16xf32> to vector<1x1x16xf32>
    tpu.vector_store %arg13[%c0_28, %c0_29, %c0_30], %45 {strides = array<i32>} : memref<2x1x16xf32, #tpu.memory_space<vmem>>, vector<1x1x16xf32>,
    %46 = vector.extract_strided_slice %10 {offsets = [0, 8], sizes = [16, 8], strides = [1, 1]} : vector<16x16xf32> to vector<16x8xf32>
    %47 = vector.extract_strided_slice %9 {offsets = [0, 8], sizes = [16, 8], strides = [1, 1]} : vector<16x32xf32> to vector<16x8xf32>
    %48 = vector.extract_strided_slice %9 {offsets = [0, 24], sizes = [16, 8], strides = [1, 1]} : vector<16x32xf32> to vector<16x8xf32>
    %cst_31 = arith.constant dense<0.000000e+00> : vector<16x16xf32>
    %49 = tpu.matmul %47, %46, %cst_31 {dimension_numbers = #tpu.dot_dimension_numbers<[1], [1], [0], [0], [0, 0, 1, 0], [], []>} : vector<16x8xf32>, vector<16x8xf32>, vector<16x16xf32> -> vector<16x16xf32>
    %c1 = arith.constant 1 : index
    %c0_32 = arith.constant 0 : index
    %c0_33 = arith.constant 0 : index
    %50 = vector.load %arg13[%c1, %c0_32, %c0_33] : memref<2x1x16xf32, #tpu.memory_space<vmem>>, vector<1x1x16xf32>
    %51 = vector.shape_cast %50 : vector<1x1x16xf32> to vector<1x16xf32>
    %cst_34 = arith.constant dense<0xFF800000> : vector<16xf32>
    %52 = vector.multi_reduction <maximumf>, %49, %cst_34 [0] : vector<16x16xf32> to vector<16xf32>
    %53 = vector.shape_cast %52 : vector<16xf32> to vector<1x16xf32>
    %54 = arith.maximumf %51, %53 : vector<1x16xf32>
    %55 = arith.subf %51, %54 : vector<1x16xf32>
    %56 = math.exp %55 : vector<1x16xf32>
    %57 = vector.broadcast %54 : vector<1x16xf32> to vector<16x16xf32>
    %58 = arith.subf %49, %57 : vector<16x16xf32>
    %59 = math.exp %58 : vector<16x16xf32>
    %c1_35 = arith.constant 1 : index
    %c0_36 = arith.constant 0 : index
    %c0_37 = arith.constant 0 : index
    %60 = vector.load %arg14[%c1_35, %c0_36, %c0_37] : memref<2x1x16xf32, #tpu.memory_space<vmem>>, vector<1x1x16xf32>
    %61 = vector.shape_cast %60 : vector<1x1x16xf32> to vector<1x16xf32>
    %62 = arith.mulf %56, %61 : vector<1x16xf32>
    %cst_38 = arith.constant dense<0.000000e+00> : vector<16xf32>
    %63 = vector.multi_reduction <add>, %59, %cst_38 [0] : vector<16x16xf32> to vector<16xf32>
    %64 = vector.shape_cast %63 : vector<16xf32> to vector<1x16xf32>
    %65 = arith.addf %62, %64 : vector<1x16xf32>
    %c1_39 = arith.constant 1 : index
    %c0_40 = arith.constant 0 : index
    %c0_41 = arith.constant 0 : index
    %66 = vector.load %arg14[%c1_39, %c0_40, %c0_41] : memref<2x1x16xf32, #tpu.memory_space<vmem>>, vector<1x1x16xf32>
    %67 = vector.shape_cast %66 : vector<1x1x16xf32> to vector<1x16xf32>
    %68 = vector.shape_cast %65 : vector<1x16xf32> to vector<1x1x16xf32>
    tpu.vector_store %arg14[%c1_39, %c0_40, %c0_41], %68 {strides = array<i32>} : memref<2x1x16xf32, #tpu.memory_space<vmem>>, vector<1x1x16xf32>,
    %c1_42 = arith.constant 1 : index
    %c0_43 = arith.constant 0 : index
    %c0_44 = arith.constant 0 : index
    %69 = vector.load %arg15[%c1_42, %c0_43, %c0_44] : memref<2x8x16xf32, #tpu.memory_space<vmem>>, vector<1x8x16xf32>
    %70 = vector.shape_cast %69 : vector<1x8x16xf32> to vector<8x16xf32>
    %71 = vector.broadcast %56 : vector<1x16xf32> to vector<8x16xf32>
    %72 = arith.mulf %71, %70 : vector<8x16xf32>
    %cst_45 = arith.constant dense<0.000000e+00> : vector<8x16xf32>
    %73 = tpu.matmul %48, %59, %cst_45 {dimension_numbers = #tpu.dot_dimension_numbers<[0], [0], [1], [1], [0, 1, 1, 1], [], []>} : vector<16x8xf32>, vector<16x16xf32>, vector<8x16xf32> -> vector<8x16xf32>
    %74 = arith.addf %72, %73 : vector<8x16xf32>
    %c1_46 = arith.constant 1 : index
    %c0_47 = arith.constant 0 : index
    %c0_48 = arith.constant 0 : index
    %75 = vector.load %arg15[%c1_46, %c0_47, %c0_48] : memref<2x8x16xf32, #tpu.memory_space<vmem>>, vector<1x8x16xf32>
    %76 = vector.shape_cast %75 : vector<1x8x16xf32> to vector<8x16xf32>
    %77 = vector.shape_cast %74 : vector<8x16xf32> to vector<1x8x16xf32>
    tpu.vector_store %arg15[%c1_46, %c0_47, %c0_48], %77 {strides = array<i32>} : memref<2x8x16xf32, #tpu.memory_space<vmem>>, vector<1x8x16xf32>,
    %c1_49 = arith.constant 1 : index
    %c0_50 = arith.constant 0 : index
    %c0_51 = arith.constant 0 : index
    %78 = vector.load %arg13[%c1_49, %c0_50, %c0_51] : memref<2x1x16xf32, #tpu.memory_space<vmem>>, vector<1x1x16xf32>
    %79 = vector.shape_cast %78 : vector<1x1x16xf32> to vector<1x16xf32>
    %80 = vector.shape_cast %54 : vector<1x16xf32> to vector<1x1x16xf32>
    tpu.vector_store %arg13[%c1_49, %c0_50, %c0_51], %80 {strides = array<i32>} : memref<2x1x16xf32, #tpu.memory_space<vmem>>, vector<1x1x16xf32>,
    %c0_i32_52 = arith.constant 0 : i32
    %81 = arith.cmpi eq, %arg2, %c0_i32_52 : i32
    %82 = arith.extui %81 : i1 to i32
    %c0_i32_53 = arith.constant 0 : i32
    %83 = arith.cmpi ne, %82, %c0_i32_53 : i32
    scf.if %83 {
      %c0_54 = arith.constant 0 : index
      %c0_55 = arith.constant 0 : index
      %c0_56 = arith.constant 0 : index
      %84 = vector.load %arg3[%c0_54, %c0_55, %c0_56] : memref<1x8x16xf32, #tpu.memory_space<vmem>>, vector<1x8x16xf32>
      %85 = vector.shape_cast %84 : vector<1x8x16xf32> to vector<8x16xf32>
      %c0_57 = arith.constant 0 : index
      %c0_58 = arith.constant 0 : index
      %86 = vector.load %arg9[%c0_57, %c0_58] : memref<8x8xf32, #tpu.memory_space<vmem>>, vector<8x8xf32>
      %cst_59 = arith.constant dense<0.000000e+00> : vector<8x16xf32>
      %87 = tpu.matmul %86, %85, %cst_59 {dimension_numbers = #tpu.dot_dimension_numbers<[0], [0], [1], [1], [0, 1, 1, 1], [], []>} : vector<8x8xf32>, vector<8x16xf32>, vector<8x16xf32> -> vector<8x16xf32>
      %c0_60 = arith.constant 0 : index
      %c0_61 = arith.constant 0 : index
      %c0_62 = arith.constant 0 : index
      %88 = vector.load %arg15[%c0_60, %c0_61, %c0_62] : memref<2x8x16xf32, #tpu.memory_space<vmem>>, vector<1x8x16xf32>
      %89 = vector.shape_cast %88 : vector<1x8x16xf32> to vector<8x16xf32>
      %c0_63 = arith.constant 0 : index
      %c0_64 = arith.constant 0 : index
      %c0_65 = arith.constant 0 : index
      %90 = vector.load %arg14[%c0_63, %c0_64, %c0_65] : memref<2x1x16xf32, #tpu.memory_space<vmem>>, vector<1x1x16xf32>
      %91 = vector.shape_cast %90 : vector<1x1x16xf32> to vector<1x16xf32>
      %92 = tpu.reciprocal %91 {approx = true} : vector<1x16xf32> -> vector<1x16xf32>
      %93 = vector.broadcast %92 : vector<1x16xf32> to vector<8x16xf32>
      %94 = arith.mulf %89, %93 : vector<8x16xf32>
      %c0_66 = arith.constant 0 : index
      %95 = memref.load %arg10[%c0_66] : memref<2xf32, #tpu.memory_space<smem>>
      %96 = vector.broadcast %95 : f32 to vector<8x16xf32>
      %97 = arith.mulf %96, %94 : vector<8x16xf32>
      %98 = arith.addf %97, %87 : vector<8x16xf32>
      %cst_67 = arith.constant 1.000000e+00 : f32
      %99 = arith.addf %cst_67, %95 : f32
      %cst_68 = arith.constant 1.000000e+00 : f32
      %100 = arith.divf %cst_68, %99 : f32
      %101 = vector.broadcast %100 : f32 to vector<8x16xf32>
      %102 = arith.mulf %98, %101 : vector<8x16xf32>
      %c1_69 = arith.constant 1 : index
      %c0_70 = arith.constant 0 : index
      %c0_71 = arith.constant 0 : index
      %103 = vector.load %arg15[%c1_69, %c0_70, %c0_71] : memref<2x8x16xf32, #tpu.memory_space<vmem>>, vector<1x8x16xf32>
      %104 = vector.shape_cast %103 : vector<1x8x16xf32> to vector<8x16xf32>
      %c1_72 = arith.constant 1 : index
      %c0_73 = arith.constant 0 : index
      %c0_74 = arith.constant 0 : index
      %105 = vector.load %arg14[%c1_72, %c0_73, %c0_74] : memref<2x1x16xf32, #tpu.memory_space<vmem>>, vector<1x1x16xf32>
      %106 = vector.shape_cast %105 : vector<1x1x16xf32> to vector<1x16xf32>
      %107 = tpu.reciprocal %106 {approx = true} : vector<1x16xf32> -> vector<1x16xf32>
      %108 = vector.broadcast %107 : vector<1x16xf32> to vector<8x16xf32>
      %109 = arith.mulf %104, %108 : vector<8x16xf32>
      %c1_75 = arith.constant 1 : index
      %110 = memref.load %arg10[%c1_75] : memref<2xf32, #tpu.memory_space<smem>>
      %111 = vector.broadcast %110 : f32 to vector<8x16xf32>
      %112 = arith.mulf %111, %109 : vector<8x16xf32>
      %113 = arith.addf %112, %87 : vector<8x16xf32>
      %cst_76 = arith.constant 1.000000e+00 : f32
      %114 = arith.addf %cst_76, %110 : f32
      %cst_77 = arith.constant 1.000000e+00 : f32
      %115 = arith.divf %cst_77, %114 : f32
      %116 = vector.broadcast %115 : f32 to vector<8x16xf32>
      %117 = arith.mulf %113, %116 : vector<8x16xf32>
      %118 = tpu.concatenate %102, %117 in 0 : vector<8x16xf32>, vector<8x16xf32> -> vector<16x16xf32>
      %c0_78 = arith.constant 0 : index
      %c0_79 = arith.constant 0 : index
      %c0_80 = arith.constant 0 : index
      %119 = vector.load %arg11[%c0_78, %c0_79, %c0_80] : memref<1x16x16xf32, #tpu.memory_space<vmem>>, vector<1x16x16xf32>
      %120 = vector.shape_cast %119 : vector<1x16x16xf32> to vector<16x16xf32>
      %121 = vector.shape_cast %118 : vector<16x16xf32> to vector<1x16x16xf32>
      tpu.vector_store %arg11[%c0_78, %c0_79, %c0_80], %121 {strides = array<i32>} : memref<1x16x16xf32, #tpu.memory_space<vmem>>, vector<1x16x16xf32>,
    } else {
    }
    return
  }
  func.func @transform_0(%arg0: i32, %arg1: i32, %arg2: i32) -> (i32, i32, i32) {
    %c0_i32 = arith.constant 0 : i32
    %c0_i32_0 = arith.constant 0 : i32
    return %arg0, %c0_i32, %arg1 : i32, i32, i32
  }
  func.func @transform_1(%arg0: i32, %arg1: i32, %arg2: i32) -> (i32, i32, i32) {
    %c0_i32 = arith.constant 0 : i32
    %c0_i32_0 = arith.constant 0 : i32
    return %arg0, %c0_i32, %arg2 : i32, i32, i32
  }
  func.func @transform_2(%arg0: i32, %arg1: i32, %arg2: i32) -> (i32, i32) {
    %c0_i32 = arith.constant 0 : i32
    %c0_i32_0 = arith.constant 0 : i32
    %c0_i32_1 = arith.constant 0 : i32
    return %c0_i32, %c0_i32_0 : i32, i32
  }
  func.func @transform_3(%arg0: i32, %arg1: i32, %arg2: i32) -> (i32, i32) {
    %c0_i32 = arith.constant 0 : i32
    %c0_i32_0 = arith.constant 0 : i32
    %c0_i32_1 = arith.constant 0 : i32
    return %c0_i32, %c0_i32_0 : i32, i32
  }
  func.func @transform_4(%arg0: i32, %arg1: i32, %arg2: i32) -> (i32, i32) {
    %c0_i32 = arith.constant 0 : i32
    %c0_i32_0 = arith.constant 0 : i32
    %c0_i32_1 = arith.constant 0 : i32
    return %c0_i32, %c0_i32_0 : i32, i32
  }
  func.func @transform_5(%arg0: i32, %arg1: i32, %arg2: i32) -> (i32, i32) {
    %c0_i32 = arith.constant 0 : i32
    %c0_i32_0 = arith.constant 0 : i32
    %c0_i32_1 = arith.constant 0 : i32
    return %c0_i32, %c0_i32_0 : i32, i32
  }
  func.func @transform_6(%arg0: i32, %arg1: i32, %arg2: i32) -> (i32, i32) {
    %c0_i32 = arith.constant 0 : i32
    %c0_i32_0 = arith.constant 0 : i32
    %c0_i32_1 = arith.constant 0 : i32
    return %c0_i32, %c0_i32_0 : i32, i32
  }
  func.func @transform_7(%arg0: i32, %arg1: i32, %arg2: i32) -> i32 {
    %c0_i32 = arith.constant 0 : i32
    %c0_i32_0 = arith.constant 0 : i32
    return %c0_i32 : i32
  }
  func.func @transform_8(%arg0: i32, %arg1: i32, %arg2: i32) -> (i32, i32, i32) {
    %c0_i32 = arith.constant 0 : i32
    %c0_i32_0 = arith.constant 0 : i32
    return %arg0, %c0_i32, %arg1 : i32, i32, i32
  }
}

</mosaic_0001>

<bundles_post_ra>
// kernel: tpu_custom_call.1
= control target key start
LH: loop header
LB: loop body
LE: loop exit
PB: predicated region body
PF: predicated region fallthrough
CT: control target
= control target key end

     0   :  { %s1931_s0 = inlined_call_operand.hbm [shape: f32[2,8,16], index: 0, kind: input, shape index: {}]   ;;  %s1932_s1 = inlined_call_operand.hbm [shape: f32[2,8,16], index: 1, kind: input, shape index: {}]   ;;  %s1933_s2 = inlined_call_operand.hbm [shape: f32[8,16], index: 2, kind: input, shape index: {}]   ;;  %s1934_s3 = inlined_call_operand.vmem [shape: f32[1,16], index: 3, kind: input, shape index: {}]   ;;  %s1935_s4 = inlined_call_operand.hbm [shape: f32[8,32], index: 4, kind: input, shape index: {}]   ;;  %s1936_s5 = inlined_call_operand.vmem [shape: f32[1,32], index: 5, kind: input, shape index: {}]   ;;  %s1937_s6 = inlined_call_operand.hbm [shape: f32[8,8], index: 6, kind: input, shape index: {}]   ;;  %s1938_s7 = inlined_call_operand.vmem [shape: f32[2], index: 7, kind: input, shape index: {}]   ;;  %s1939_s8 = inlined_call_operand.hbm [shape: f32[2,16,16], index: 8, kind: output, shape index: {}]  }
   0x1   :  { %1944 = sst [smem:[#allocation29_spill]] %s1933_s2 }
   0x2   :  { %1945 = sst [smem:[#allocation30_spill]] %s1935_s4 }
   0x3   :  { %1946 = sst [smem:[#allocation31_spill]] %s1937_s6 }
   0x4   :  { %1947 = sst [smem:[#allocation32_spill]] %s1938_s7 }
   0x5   :  { %13 = vsyncpa [#allocation7], 0 }
   0x6   :  { %15 = vsyncpa [#allocation7 + $0x1], 0 }
   0x7   :  { %16 = vsyncpa [#allocation11], 0 }
   0x8   :  { %18 = vsyncpa [#allocation11 + $0x1], 0 }
   0x9   :  { %19 = vsyncpa [#allocation14], 0 }
   0xa   :  { %20 = vsyncpa [#allocation9], 0 }
   0xb   :  { %21 = vsyncpa [#allocation8], 0 }
   0xc   :  { %23 = vsyncpa [#allocation8 + $0x1], 0  ;;  %s1681_s27 = smov 0   ;;  %s1683_s28 = smov 0  }
   0xd   :  { %s1685_s29 = smov 0   ;;  %s1687_s30 = smov 0  }
   0xe   :  { %s1689_s9 = smov 0   ;;  %s1691_s10 = smov 0  }
   0xf LB: > { %1948 = sst [smem:[#allocation24_spill]] %s1611_s29  ;;  %s1712_s11 = sadd.s32 4294967295, %s1623_s10   ;;  %s1623_s10 = sphi %s1691_s10, %s29_s10   ;;  %s1619_s9 = sphi %s1689_s9, %s1967_s9   ;;  %s1615_s30 = sphi %s1687_s30, %s1966_s30   ;;  %s1611_s29 = sphi %s1685_s29, %s1965_s29   ;;  %s1607_s28 = sphi %s1683_s28, %s1969_s28   ;;  %s1603_s27 = sphi %s1681_s27, %s1968_s27  }
  0x10   : > { %1949 = sst [smem:[#allocation25_spill]] %s1619_s9  ;;  %p1179_p0 = scmp.ge.s32.totalorder %s1623_s10, 1 }
  0x11   : > { %p71_p1 = scmp.eq.s32.totalorder %s1712_s11, 0  ;;  %p263_p2 = scmp.lt.s32.totalorder %s1623_s10, 3 }
  0x12   : > { %s1950_s2 = sld [smem:[#allocation29_spill]]  ;;  %p1184_p4 = scmp.ge.s32.totalorder %s1623_s10, 2 }
  0x13   : > { %p1720_p3 = pnand %p1179_p0, %p263_p2  ;;  %s1625_s16 = smov [#allocation12]  }
  0x14   : > { %s277_s17 = sshll.u32 %s1625_s16, 4  ;;  %s1952_s4 = sld [smem:[#allocation30_spill]]  ;;  %s278_s17 = int_to_ptr.vmem [resolvable:$true] %s277_s17 }
  0x15   : > { %p1245_p5 = pneg %p1720_p3  ;;  %s1954_s6 = sld [smem:[#allocation31_spill]] }
  0x16   : > { %s1626_s25 = smov [#allocation13]   ;;  %s1955_s7 = sld [smem:[#allocation32_spill]] }
  0x17   : > { %p1732_p6 = pnand %p1245_p5, %p71_p1  ;;  %s292_s26 = sshll.u32 %s1626_s25, 4  ;;  %s293_s26 = int_to_ptr.vmem [resolvable:$true] %s292_s26 }
  0x18   : > { %s275_s14 = sshll.u32 %s1950_s2, 4  ;;  %s1627_s18 = smov [#allocation15]   ;;  %s276_s14 = int_to_ptr.hbm [resolvable:$true] %s275_s14 }
  0x19   : > { %1248 = dma.hbm_to_vmem [thread:$0]  (!%p1732_p6), %s276_s14, 128, %s278_s17, [#allocation11]  }
  0x1a   : > { %s290_s20 = sshll.u32 %s1952_s4, 4  ;;  %s307_s19 = sshll.u32 %s1627_s18, 4  ;;  %s291_s20 = int_to_ptr.hbm [resolvable:$true] %s290_s20  ;;  %s308_s19 = int_to_ptr.vmem [resolvable:$true] %s307_s19 }
  0x1b   : > { %s305_s24 = sshll.u32 %s1954_s6, 4  ;;  %s1628_s14 = smov [#allocation16]   ;;  %s306_s24 = int_to_ptr.hbm [resolvable:$true] %s305_s24 }
  0x1c   : > { %1251 = dma.hbm_to_vmem [thread:$0]  (!%p1732_p6), %s291_s20, 128, %s293_s26, [#allocation14]  }
  0x1d   : > { %s317_s16 = sshll.u32 %s1955_s7, 4  ;;  %s1178_s17 = sadd.s32 4294967294, %s1623_s10   ;;  %s318_s16 = int_to_ptr.vmem [resolvable:$true] %s317_s16 }
  0x1e   : > { %1254 = dma.hbm_to_vmem [thread:$0]  (!%p1732_p6), %s306_s24, 128, %s308_s19, [#allocation14]  }
  0x1f   : > { %1257 = dma.vmem_to_smem (!%p1732_p6), %s318_s16, 16, %s1628_s14, [#allocation9]  }
  0x20   : > { %s48_s20 = sadd.s32 1, %s1619_s9  ;;  %s57_s22 = sadd.s32 1, %s1611_s29 }
  0x21   : > { %p50_p7 = scmp.ge.s32.totalorder %s48_s20, 2  ;;  %p64_p8 = scmp.ne.s32.totalorder %s1611_s29, %s1607_s28 }
  0x22   : > { %p65_p9 = scmp.eq.s32.totalorder %s1623_s10, 0  ;;  %p70_p11 = scmp.ne.s32.totalorder %s1607_s28, %s1603_s27 }
  0x23   : > { %s1971_s20 = smov (%p50_p7, %s48_s20), 0  ;;  %p250_p12 = scmp.eq.s32.totalorder %s1712_s11, 1 }
  0x24   : > { %1956 = sst [smem:[#allocation26_spill]] %s1971_s20  ;;  %p1758_p10 = por %p65_p9, %p64_p8 }
  0x25   : > { %s52_s21 = ssub.s32 %s1619_s9, %s1971_s20  ;;  %p1769_p0 = por %p71_p1, %p70_p11 }
  0x26   : > { %p55_p13 = scmp.eq.s32.totalorder %s52_s21, 0  ;;  %p1773_p2 = por %p250_p12, %p64_p8 }
  0x27   : > { %p256_p5 = scmp.eq.s32.totalorder %s1178_s17, 1  ;;  %p1273_p7 = scmp.lt.s32.totalorder %s1623_s10, 2 }
  0x28   : > { %s1778_s26 = scalar_select %p55_p13, %s1611_s29, %s57_s22  }
  0x29   : > { %p1780_p6 = por %p256_p5, %p70_p11  ;;  %s328_s13 = sand.u32 1, %s1611_s29  }
  0x2a   : > { %1960 = sst [smem:[#allocation27_spill]] %s1778_s26  ;;  %s1186_s16 = sshll.u32 %s1619_s9, 3 }
  0x2b   : > { %s1961_s12 = scalar_select %p1780_p6, 1, 0 }
  0x2c   : > { %s1185_s18 = sshll.u32 %s328_s13, 3  ;;  %s337_s21 = scalar_lea.hbm %s1931_s0, %s1186_s16 }
  0x2d   : > { %1962 = sst [smem:[#allocation28_spill]] %s1961_s12  ;;  %s339_s2 = sshll.u32 %s337_s21, 4  ;;  %s340_s2 = int_to_ptr.hbm [resolvable:$true] %s339_s2 }
  0x2e   : > { %s332_s4 = scalar_lea.vmem [#allocation6], %s1185_s18  ;;  %p1259_p8 = pnand %p1273_p7, %p1758_p10 }
  0x2f   : > { %s341_s6 = sshll.u32 %s332_s4, 4  ;;  %s357_s7 = scalar_lea.hbm %s1932_s1, %s1186_s16  ;;  %s342_s6 = int_to_ptr.vmem [resolvable:$true] %s341_s6 }
  0x30   : > { %s348_s20 = sand.u32 1, %s1623_s10   ;;  %s329_s26 = scalar_lea.sflag [#allocation7], %s328_s13 }
  0x31   : > { %1261 = dma.hbm_to_vmem [thread:$0]  (!%p1259_p8), %s340_s2, 128, %s342_s6, %s329_s26  }
  0x32   : > { %s359_s9 = sshll.u32 %s357_s7, 4  ;;  %s352_s29 = scalar_lea.vmem [#allocation10], %s1185_s18  ;;  %s360_s9 = int_to_ptr.hbm [resolvable:$true] %s359_s9 }
  0x33   : > { %s361_s12 = sshll.u32 %s352_s29, 4  ;;  %s349_s19 = scalar_lea.sflag [#allocation11], %s348_s20  ;;  %s362_s12 = int_to_ptr.vmem [resolvable:$true] %s361_s12 }
  0x34   : > { %1264 = dma.hbm_to_vmem [thread:$0]  (!%p1259_p8), %s360_s9, 128, %s362_s12, %s349_s19  }
  0x35   : > { %370 = sbr.rel (%p1720_p3) target bundleno = 991 (0x3df), region = 52  ;;  %s1799_s4 = sand.u32 (!%p1720_p3), 1, %s1607_s28  }
  0x36   : > { %s1190_s23 = sshll.u32 (!%p1720_p3), %s1799_s4, 3  ;;  %s373_s16 = scalar_lea.sflag (!%p1720_p3), [#allocation7], %s1799_s4 }
  0x37   : > { %s376_s13 = scalar_lea.vmem (!%p1720_p3), [#allocation6], %s1190_s23 }
  0x3a   : > { %1578 = dma.done.wait (%p1769_p0), %s373_s16, 128  }
  0x3b   : > { %1580 = vsyncadd (%p1769_p0), %s373_s16, 4294967168  ;;  %s382_s2 = sand.u32 1, %s1712_s11   ;;  %s386_s7 = scalar_lea.vmem [#allocation10], %s1190_s23 }
  0x3c   : > { %s383_s6 = scalar_lea.sflag [#allocation11], %s382_s2 }
  0x3d   : > { %1582 = dma.done.wait (%p1769_p0), %s383_s6, 128  }
  0x3e   : > { %1584 = vsyncadd (%p1769_p0), %s383_s6, 4294967168 }
  0x3f   : > { %1586 = dma.done.wait (%p71_p1), [#allocation11], 128  }
  0x40   : > { %1588 = vsyncadd (%p71_p1), [#allocation11], 4294967168 }
  0x41   : > { %1590 = dma.done.wait (%p71_p1), [#allocation14], 256  }
  0x42   : > { %1592 = vsyncadd (%p71_p1), [#allocation14], 4294967040 }
  0x43   : > { %1594 = dma.done.wait (%p71_p1), [#allocation9], 16  }
  0x44   : > { %1596 = vsyncadd (%p71_p1), [#allocation9], 4294967280 }
  0x45   : > { %412 = sfence }
  0x46   : > { %v450_v0 = vld [vmem:[%s376_s13] sm:$0xff]  ;;  %v528_v2 = vld [vmem:[%s386_s7] sm:$0xff]  ;;  %vm488_vm0 = vcmask 64512   ;;  %vm518_vm1 = vcmask 130048   ;;  %s1629_s20 = smov 120   ;;  %s1630_s24 = smov 112  }
  0x47   : > { %v451_v1 = vld [vmem:[#allocation12] sm:$0xff]  ;;  %456 = vxpose.xlu0.b32.start.end [1/1] (short) (narrow) %v450_v0, 16  ;;  %v529_v3 = vld [vmem:[#allocation13] sm:$0xff]  ;;  %v1338_v8 = vld [vmem:[%s1934_s3] ss:$0 sm:$0xff]  ;;  %s1631_s26 = smov 104  }
  0x48   : > { %510 = vmatpush.msra.mxu0 %v451_v1  ;;  %588 = vmatpush.msra.mxu1 %v529_v3  ;;  %v1339_v13 = vld [vmem:[%s1936_s5] ss:$0 sm:$0xff]  ;;  %v891_v20 = vld [vmem:[#allocation15] sm:$0xff]  ;;  %vm521_vm2 = vcmask 122880   ;;  %v1632_v21 = vmov -inf   ;;  %v1633_v27 = vmov 0.0  }
  0x49   : > { %522 = vst.msk [vmem:[#allocation3] sm:$0x1] %vm521_vm2, %v1632_v21  ;;  %s1858_s12 = sld [smem:[#allocation16]]  ;;  %s1196_s21 = sshll.u32 %s1799_s4, 4 }
  0x4a   : > { %942 = vmatpush.msrb.mxu1 %v450_v0  ;;  %523 = vst.msk [vmem:[#allocation3 + $0x1] sm:$0x1] %vm521_vm2, %v1632_v21  ;;  %s1875_s17 = sld [smem:[#allocation16 + $0x1]]  ;;  %s1877_s22 = scalar_lea.vmem [#allocation17], %s1196_s21 }
  0x4b   : > { %524 = vst.msk [vmem:[#allocation4] sm:$0x1] %vm521_vm2, %v1633_v27  ;;  %s1218_s23 = sshll.u32 %s1615_s30, 4  ;;  %s1023_s7 = sshll.u32 %s1877_s22, 4  ;;  %s1024_s7 = int_to_ptr.vmem [resolvable:$true] %s1023_s7 }
  0x4c   : > { %525 = vst.msk [vmem:[#allocation4 + $0x1] sm:$0x1] %vm521_vm2, %v1633_v27  ;;  %s1022_s2 = scalar_lea.hbm %s1939_s8, %s1218_s23  ;;  %s1010_s30 = scalar_lea.sflag [#allocation8], %s1799_s4 }
  0x4d   : > { %526 = vst.msk [vmem:[#allocation5] sm:$0xff] %vm518_vm1, %v1633_v27  ;;  %s1025_s29 = sshll.u32 %s1022_s2, 4  ;;  %s1026_s29 = int_to_ptr.hbm [resolvable:$true] %s1025_s29 }
  0x4e   : > { %527 = vst.msk [vmem:[#allocation5 + $0x8] sm:$0xff] %vm518_vm1, %v1633_v27  ;;  %s1539_s9 = sshra.s32 %s1026_s29, 4  ;;  %s1540_s9 = int_to_ptr.hbm [resolvable:$true] %s1539_s9 }
  0x4f   : > { %s958_s18 = sadd.f32 1.0, %s1858_s12  ;;  %s1541_s11 = scalar_lea.hbm %s1540_s9, 16 }
  0x50   : > { %v633_v41 = vld [vmem:[#allocation3] sm:$0x1]  ;;  %s988_s19 = sadd.f32 1.0, %s1875_s17  ;;  %p1542_p1 = scmp.ne.s32.totalorder %s1540_s9, %s1541_s11 }
  0x51   : > { %v959_v3 = vstv %s958_s18  ;;  %p1546_p10 = scmp.lt.s32.totalorder %s1540_s9, %s1939_s8 }
  0x52   : > { %v657_v61 = vld [vmem:[#allocation4] sm:$0x1]  ;;  %vm965_vm3 = vweird.f32 %v959_v3  ;;  %p1543_p3 = pnand %p1542_p1, %p1773_p2 }
  0x54   : > { %p1544_p9 = pneg %p1543_p3 }
  0x57   : > { %534 = vxpose.xlu0.b32.start.end [1/1] (short) (narrow) %v528_v2, 16 }
  0xeb   : > { %v472_v4 = vpop.trf.xlu0 }
  0xec   : > { %1197 = vmatmul.msk.f32.vlgmr.msra.gmra.mxu0 %vm488_vm0, %v472_v4 }
  0xf3   : > { %v473_v5 = vpop.trf.xlu0 }
  0xf4   : > { %1198 = vmatmul.msk.f32.gmra.mxu0 %vm488_vm0, %v473_v5 }
  0xfb   : > { %v550_v6 = vpop.trf.xlu0 }
  0xfc   : > { %1199 = vmatmul.msk.f32.vlgmr.msra.gmra.mxu1 %vm488_vm0, %v550_v6  ;;  %v971_v6 = vand.u32 2147483648, %v959_v3 }
 0x103   : > { %v551_v7 = vpop.trf.xlu0 }
 0x104   : > { %1200 = vmatmul.msk.f32.gmra.mxu1 %vm488_vm0, %v551_v7 }
 0x169   : > { %v512_v9 = vpop.f32.mrf.mxu0 }
 0x16a   : > { %v513_v10 = vadd.f32 %v1338_v8, %v512_v9 }
 0x16c   : > { %519 = vst.msk [vmem:[#allocation2] sm:$0xff] %vm518_vm1, %v513_v10  ;;  %v972_v10 = vor.u32 1.1754944e-38, %v971_v6 }
 0x171   : > { %v515_v11 = vpop.f32.mrf.mxu0 }
 0x172   : > { %v516_v12 = vadd.f32 %v1338_v8, %v515_v11  ;;  %v969_v8 = vand.u32 2147483647, %v959_v3 }
 0x173   : > { %v596_v17 = vld [vmem:[#allocation2] sm:$0xff] }
 0x174   : > { %520 = vst.msk [vmem:[#allocation2 + $0x8] sm:$0xff] %vm518_vm1, %v516_v12  ;;  %vm970_vm6 = vcmp.eq.f32.partialorder %v969_v8, 8.507059e+37 }
 0x179   : > { %v590_v14 = vpop.f32.mrf.mxu1 }
 0x17a   : > { %v591_v15 = vadd.f32 %v1339_v13, %v590_v14 }
 0x17b   : > { %v597_v16 = vld [vmem:[#allocation2 + $0x8] sm:$0xff] }
 0x17c   : > { %746 = vrot.lane.b32.xlu2 %v597_v16, %s1629_s20  ;;  %1201 = vmatpush.xpose.msk.msra.mxu2 %vm488_vm0, %v597_v16  ;;  %v671_v16 = vld [vmem:[#allocation5] sm:$0xff] }
 0x17d   : > { %676 = vrot.lane.b32.xlu1 %v591_v15, %s1630_s24 }
 0x180   : > { %1202 = vmatpush.xpose.msk.msra.mxu2 %vm488_vm0, %v596_v17 }
 0x181   : > { %v593_v18 = vpop.f32.mrf.mxu1 }
 0x182   : > { %v594_v19 = vadd.f32 %v1339_v13, %v593_v18 }
 0x183   : > { %1203 = vmatmul.msk.f32.vlgmr.msra.gmra.mxu2 %vm488_vm0, %v591_v15 }
 0x184   : > { %744 = vrot.lane.b32.xlu2 %v596_v17, %s1629_s20 }
 0x185   : > { %678 = vrot.lane.b32.xlu1 %v594_v19, %s1630_s24  ;;  %s1545_s24 = scalar_lea.hbm %s1939_s8, 32 }
 0x186   : > { %p1547_p11 = scmp.lt.s32.totalorder %s1545_s24, %s1541_s11 }
 0x188   : > { %p1548_p12 = por %p1547_p11, %p1546_p10 }
 0x18a   : > { %p1549_p13 = pnand %p1548_p12, %p1544_p9 }
 0x18b   : > { %1204 = vmatmul.msk.f32.gmra.mxu2 %vm488_vm0, %v594_v19 }
 0x18c   : > { %742 = vrot.lane.b32.xlu2 %v594_v19, %s1629_s20 }
 0x18d   : > { %740 = vrot.lane.b32.xlu1 %v591_v15, %s1629_s20 }
 0x194   : > { %825 = vrot.lane.b32.xlu2 %v594_v19, %s1631_s26 }
 0x195   : > { %823 = vrot.lane.b32.xlu1 %v591_v15, %s1631_s26 }
 0x1ba   : > { %892 = vxpose.xlu2.b32.start.end [1/1] (short) (narrow) %v891_v20, 8 }
 0x1d6   : > { %v747_v23 = vpop.permute.xlu2 %746 }
 0x1de   : > { %v745_v25 = vpop.permute.xlu2 %744 }
 0x1e6   : > { %v1845_v28 = vpop.permute.xlu2 %742 }
 0x1ee   : > { %v826_v32 = vpop.permute.xlu2 %825 }
 0x1ef   : > { %v677_v22 = vpop.permute.xlu1 %676 }
 0x1f0   : > { %682 = vxpose.xlu0.b32.start [1/2] (short) (narrow) %v677_v22, 8 }
 0x1f7   : > { %v679_v24 = vpop.permute.xlu1 %678 }
 0x1f8   : > { %683 = vxpose.xlu0.b32.end [2/2] (short) (narrow) %v679_v24, 8 }
 0x1ff   : > { %v1842_v26 = vpop.permute.xlu1 %740 }
 0x206   : > { %v627_v29 = vpop.f32.mrf.mxu2 }
 0x207   : > { %v824_v30 = vpop.permute.xlu1 %823  ;;  %v635_v33 = vsel %vm518_vm1, %v627_v29, -inf }
 0x208   : > { %829 = vxpose.xlu1.b32.start [1/2] (short) (narrow) %v824_v30, 8 }
 0x20e   : > { %v630_v31 = vpop.f32.mrf.mxu2 }
 0x20f   : > { %v636_v34 = vsel %vm518_vm1, %v630_v31, -inf }
 0x210   : > { %v637_v35 = vmax.f32 %v635_v33, %v636_v34  ;;  %830 = vxpose.xlu1.b32.end [2/2] (short) (narrow) %v826_v32, 8 }
 0x212   : > { %v638_v36 = vrot.slane %v637_v35, 4 }
 0x214   : > { %v639_v37 = vmax.f32 %v637_v35, %v638_v36 }
 0x216   : > { %v640_v38 = vrot.slane %v639_v37, 2 }
 0x218   : > { %v641_v39 = vmax.f32 %v639_v37, %v640_v38 }
 0x21a   : > { %v642_v40 = vrot.slane %v641_v39, 1 }
 0x21c   : > { %v643_v42 = vmax.f32 %v641_v39, %v642_v40 }
 0x21e   : > { %v644_v43 = vmax.f32 %v633_v41, %v643_v42  ;;  %v989_v42 = vstv %s988_s19 }
 0x21f   : > { %vm995_vm7 = vweird.f32 %v989_v42 }
 0x220   : > { %v649_v44 = vperm.slane %v644_v43, 0  ;;  %739 = vst.msk [vmem:[#allocation3] sm:$0x1] %vm521_vm2, %v644_v43  ;;  %v645_v49 = vsub.f32 %v633_v41, %v644_v43  ;;  %v780_v41 = vld [vmem:[#allocation3 + $0x1] sm:$0x1] }
 0x222   : > { %v651_v45 = vsub.f32 %v627_v29, %v649_v44  ;;  %v652_v46 = vsub.f32 %v630_v31, %v649_v44  ;;  %v646_v54 = vmul.f32 1.442695, %v645_v49 }
 0x224   : > { %v653_v47 = vmul.f32 1.442695, %v651_v45  ;;  %v655_v48 = vmul.f32 1.442695, %v652_v46 }
 0x226   : > { %1340 = vpow2.f32 %v653_v47 }
 0x227   : > { %1342 = vpow2.f32 %v655_v48 }
 0x228   : > { %1344 = vpow2.f32 %v646_v54  ;;  %v999_v54 = vand.u32 2147483647, %v989_v42 }
 0x229   : > { %1346 = vrcp.f32 %v959_v3 }
 0x22a   : > { %vm1000_vm10 = vcmp.eq.f32.partialorder %v999_v54, 8.507059e+37 }
 0x22c   : > { %v1341_v50 = vpop.eup %1340 }
 0x22d   : > { %v1343_v51 = vpop.eup %1342  ;;  %v659_v52 = vsel %vm518_vm1, %v1341_v50, 0.0 }
 0x22e   : > { %v660_v53 = vsel %vm518_vm1, %v1343_v51, 0.0  ;;  %731 = vmatpush.msra.mxu3 %v1343_v51  ;;  %v1345_v60 = vpop.eup %1344 }
 0x22f   : > { %v661_v55 = vadd.f32 %v660_v53, %v659_v52  ;;  %v658_v0 = vmul.f32 %v1345_v60, %v657_v61  ;;  %v1347_v4 = vpop.eup %1346  ;;  %v673_v15 = vperm.slane %v1345_v60, 0  ;;  %v1001_v52 = vand.u32 2147483648, %v989_v42 }
 0x230   : > { %732 = vmatpush.msra.mxu3 %v1341_v50  ;;  %v961_v5 = vmul.f32 %v1347_v4, %v959_v3  ;;  %vm966_vm4 = vweird.f32 %v1347_v4 }
 0x231   : > { %v662_v56 = vrot.slane %v661_v55, 4  ;;  %vm967_vm5 = vmor %vm965_vm3, %vm966_vm4  ;;  %v675_v18 = vmul.f32 %v673_v15, %v671_v16  ;;  %v818_v15 = vld [vmem:[#allocation5 + $0x8] sm:$0xff] }
 0x232   : > { %1206 = vmatpush.xpose.msk.msrb.mxu3 %vm488_vm0, %v747_v23  ;;  %v962_v7 = vsub.f32 1.0, %v961_v5 }
 0x233   : > { %v663_v57 = vadd.f32 %v662_v56, %v661_v55  ;;  %v1002_v56 = vor.u32 1.1754944e-38, %v1001_v52 }
 0x234   : > { %v963_v9 = vmul.f32 %v1347_v4, %v962_v7 }
 0x235   : > { %v664_v58 = vrot.slane %v663_v57, 2 }
 0x236   : > { %1207 = vmatpush.xpose.msk.msrb.mxu3 %vm488_vm0, %v745_v25  ;;  %v964_v11 = vadd.f32 %v1347_v4, %v963_v9  ;;  %v955_v25 = vstv %s1858_s12  ;;  %v804_v9 = vld [vmem:[#allocation4 + $0x1] sm:$0x1] }
 0x237   : > { %v665_v59 = vadd.f32 %v664_v58, %v663_v57 }
 0x238   : > { %v968_v13 = vsel %vm967_vm5, %v1347_v4, %v964_v11 }
 0x239   : > { %v666_v62 = vrot.slane %v665_v59, 1  ;;  %v973_v14 = vsel %vm970_vm6, %v972_v10, %v968_v13 }
 0x23a   : > { %1219 = vpush %v973_v14 }
 0x23b   : > { %v667_v63 = vadd.f32 %v666_v62, %v665_v59 }
 0x23d   : > { %v668_v1 = vadd.f32 %v667_v63, %v658_v0 }
 0x23f   : > { %670 = vst.msk [vmem:[#allocation4] sm:$0x1] %vm521_vm2, %v668_v1 }
 0x246   : > { %v948_v17 = vld [vmem:[#allocation4] sm:$0x1] }
 0x247   : > { %1348 = vrcp.f32 %v948_v17 }
 0x248   : > { %1350 = vrcp.f32 %v989_v42 }
 0x24d   : > { %v1349_v21 = vpop.eup %1348 }
 0x24e   : > { %v951_v23 = vperm.slane %v1349_v21, 0  ;;  %v1351_v46 = vpop.eup %1350 }
 0x24f   : > { %v991_v49 = vmul.f32 %v1351_v46, %v989_v42  ;;  %vm996_vm8 = vweird.f32 %v1351_v46 }
 0x250   : > { %vm997_vm9 = vmor %vm995_vm7, %vm996_vm8 }
 0x251   : > { %v992_v53 = vsub.f32 1.0, %v991_v49 }
 0x253   : > { %v908_v2 = vpop.trf.xlu2  ;;  %v993_v55 = vmul.f32 %v1351_v46, %v992_v53 }
 0x254   : > { %1211 = vmatmul.msk.f32.vlgmr.msrb.gmra.mxu1 %vm488_vm0, %v908_v2 }
 0x255   : > { %v994_v57 = vadd.f32 %v1351_v46, %v993_v55 }
 0x257   : > { %v998_v59 = vsel %vm997_vm9, %v1351_v46, %v994_v57 }
 0x258   : > { %v1003_v61 = vsel %vm1000_vm10, %v1002_v56, %v998_v59 }
 0x259   : > { %1221 = vpush %v1003_v61 }
 0x26b   : > { %s1220_s14 = spop %1219 }
 0x26c   : > { %v975_v29 = vstv %s1220_s14 }
 0x28a   : > { %s1222_s6 = spop %1221 }
 0x294   : > { %v698_v12 = vpop.trf.xlu0 }
 0x295   : > { %1205 = vmatmul.msk.f32.vlgmr.msra.gmra.mxu3 %vm518_vm1, %v698_v12 }
 0x29d   : > { %1208 = vmatmul.msk.f32.vlgmr.msrb.gmra.mxu3 %vm488_vm0, %v1842_v26 }
 0x2a5   : > { %1209 = vmatmul.msk.f32.gmra.mxu3 %vm488_vm0, %v1845_v28 }
 0x2ac   : > { %v845_v1 = vpop.trf.xlu1 }
 0x2d1   : > { %v1869_v26 = vpop.f32.mrf.mxu1 }
 0x318   : > { %v734_v19 = vpop.f32.mrf.mxu3 }
 0x319   : > { %v737_v20 = vadd.f32 %v734_v19, %v675_v18 }
 0x31b   : > { %738 = vst.msk [vmem:[#allocation5] sm:$0xff] %vm518_vm1, %v737_v20 }
 0x320   : > { %v773_v22 = vpop.f32.mrf.mxu3 }
 0x321   : > { %v781_v32 = vsel %vm518_vm1, %v773_v22, -inf }
 0x322   : > { %v947_v24 = vld [vmem:[#allocation5] sm:$0xff] }
 0x323   : > { %v953_v27 = vmul.f32 %v951_v23, %v947_v24  ;;  %v985_v23 = vstv %s1875_s17 }
 0x325   : > { %v956_v28 = vmul.f32 %v955_v25, %v953_v27  ;;  %v1005_v27 = vstv %s1222_s6 }
 0x327   : > { %v957_v30 = vadd.f32 %v956_v28, %v1869_v26 }
 0x328   : > { %v776_v31 = vpop.f32.mrf.mxu3 }
 0x329   : > { %v976_v33 = vmul.f32 %v975_v29, %v957_v30  ;;  %v782_v34 = vsel %vm518_vm1, %v776_v31, -inf }
 0x32a   : > { %v783_v35 = vmax.f32 %v781_v32, %v782_v34 }
 0x32b   : > { %1007 = vst.msk [vmem:[%s1877_s22] sm:$0xff] %vm518_vm1, %v976_v33 }
 0x32c   : > { %v784_v36 = vrot.slane %v783_v35, 4 }
 0x32e   : > { %v785_v37 = vmax.f32 %v783_v35, %v784_v36 }
 0x330   : > { %v786_v38 = vrot.slane %v785_v37, 2 }
 0x332   : > { %v787_v39 = vmax.f32 %v785_v37, %v786_v38 }
 0x334   : > { %v788_v40 = vrot.slane %v787_v39, 1 }
 0x336   : > { %v789_v43 = vmax.f32 %v787_v39, %v788_v40 }
 0x338   : > { %v790_v44 = vmax.f32 %v780_v41, %v789_v43 }
 0x33a   : > { %v795_v45 = vperm.slane %v790_v44, 0  ;;  %886 = vst.msk [vmem:[#allocation3 + $0x1] sm:$0x1] %vm521_vm2, %v790_v44  ;;  %v791_v58 = vsub.f32 %v780_v41, %v790_v44 }
 0x33c   : > { %v797_v47 = vsub.f32 %v773_v22, %v795_v45  ;;  %v798_v48 = vsub.f32 %v776_v31, %v795_v45  ;;  %v792_v2 = vmul.f32 1.442695, %v791_v58 }
 0x33e   : > { %v799_v50 = vmul.f32 1.442695, %v797_v47  ;;  %v801_v51 = vmul.f32 1.442695, %v798_v48 }
 0x340   : > { %1352 = vpow2.f32 %v799_v50 }
 0x341   : > { %1354 = vpow2.f32 %v801_v51 }
 0x342   : > { %1356 = vpow2.f32 %v792_v2 }
 0x346   : > { %v1353_v60 = vpop.eup %1352 }
 0x347   : > { %v1355_v62 = vpop.eup %1354  ;;  %v806_v63 = vsel %vm518_vm1, %v1353_v60, 0.0 }
 0x348   : > { %v807_v0 = vsel %vm518_vm1, %v1355_v62, 0.0  ;;  %878 = vmatpush.msrb.mxu0 %v1355_v62  ;;  %v1357_v8 = vpop.eup %1356 }
 0x349   : > { %v808_v3 = vadd.f32 %v807_v0, %v806_v63  ;;  %v805_v12 = vmul.f32 %v1357_v8, %v804_v9  ;;  %v820_v14 = vperm.slane %v1357_v8, 0 }
 0x34a   : > { %879 = vmatpush.msrb.mxu0 %v1353_v60 }
 0x34b   : > { %v809_v4 = vrot.slane %v808_v3, 4  ;;  %1210 = vmatmul.msk.f32.vlgmr.msrb.gmra.mxu0 %vm518_vm1, %v845_v1  ;;  %v822_v17 = vmul.f32 %v820_v14, %v818_v15 }
 0x34d   : > { %v810_v5 = vadd.f32 %v809_v4, %v808_v3 }
 0x34f   : > { %v811_v6 = vrot.slane %v810_v5, 2 }
 0x351   : > { %v812_v7 = vadd.f32 %v811_v6, %v810_v5 }
 0x353   : > { %v813_v10 = vrot.slane %v812_v7, 1 }
 0x355   : > { %v814_v11 = vadd.f32 %v813_v10, %v812_v7 }
 0x357   : > { %v815_v13 = vadd.f32 %v814_v11, %v805_v12 }
 0x359   : > { %816 = vst.msk [vmem:[#allocation4 + $0x1] sm:$0x1] %vm521_vm2, %v815_v13 }
 0x360   : > { %v978_v16 = vld [vmem:[#allocation4 + $0x1] sm:$0x1] }
 0x361   : > { %1358 = vrcp.f32 %v978_v16 }
 0x367   : > { %v1359_v20 = vpop.eup %1358 }
 0x368   : > { %v981_v21 = vperm.slane %v1359_v20, 0 }
 0x3c8   : > { %v881_v18 = vpop.f32.mrf.mxu0 }
 0x3c9   : > { %v884_v19 = vadd.f32 %v881_v18, %v822_v17 }
 0x3cb   : > { %885 = vst.msk [vmem:[#allocation5 + $0x8] sm:$0xff] %vm518_vm1, %v884_v19 }
 0x3d2   : > { %v977_v22 = vld [vmem:[#allocation5 + $0x8] sm:$0xff] }
 0x3d3   : > { %v983_v24 = vmul.f32 %v981_v21, %v977_v22 }
 0x3d5   : > { %v986_v25 = vmul.f32 %v985_v23, %v983_v24 }
 0x3d7   : > { %v987_v28 = vadd.f32 %v986_v25, %v1869_v26 }
 0x3d9   : > { %v1006_v29 = vmul.f32 %v1005_v27, %v987_v28 }
 0x3db   : > { %1008 = vst.msk [vmem:[%s1877_s22 + $0x8] sm:$0xff] %vm518_vm1, %v1006_v29 }
 0x3dc   : > { %1552 = shalt.err (!%p1549_p13)
}
 0x3dd   : > { %s1634_s4 = smov 128   ;;  %s1635_s18 = smov 8  }
 0x3de   : > { %1243 = dma.vmem_to_hbm [thread:$0]  (%p1773_p2), %s1024_s7, 256, %s1026_s29, %s1010_s30, %s1634_s4, %s1634_s4, %s1635_s18  }
 0x3df PF: > { %s1040_s21 = sand.u32 1, %s1603_s27   ;;  %p1266_p0 = pnand %p1184_p4, %p1780_p6 }
 0x3e0   : > { %s1041_s17 = scalar_lea.sflag [#allocation8], %s1040_s21 }
 0x3e1   : > { %p1267_p5 = pneg %p1266_p0 }
 0x3e3   : > { %1598 = dma.done.wait (%p1267_p5), %s1041_s17, 256  }
 0x3e4   : > { %1600 = vsyncadd (%p1267_p5), %s1041_s17, 4294967040  ;;  %s29_s10 = sadd.s32 1, %s1623_s10   ;;  %s1964_s22 = sld [smem:[#allocation24_spill]] }
 0x3e5   : > { %p26_p7 = scmp.ge.s32.totalorder %s29_s10, 4   ;;  %s1965_s29 = sld [smem:[#allocation27_spill]] }
 0x3e6   : > { %s1966_s30 = sld [smem:[#allocation25_spill]]  ;;  %s1968_s27 = smov %s1607_s28 }
 0x3e7   : > { %s1967_s9 = sld [smem:[#allocation26_spill]]  ;;  %28 = sbr.rel (!%p26_p7) target bundleno = 15 (0xf), region = 138 }
 0x3ea   : > { %s1969_s28 = smov %s1964_s22 }
 0x3ec   :  { %1047 = vsyncpa [#allocation7], 1 }
 0x3ed   :  { %1049 = vsyncpa [#allocation7 + $0x1], 1 }
 0x3ee   :  { %1050 = vsyncpa [#allocation11], 1 }
 0x3ef   :  { %1052 = vsyncpa [#allocation11 + $0x1], 1 }
 0x3f0   :  { %1053 = vsyncpa [#allocation14], 1 }
 0x3f1   :  { %1054 = vsyncpa [#allocation8], 1 }
 0x3f2   :  { %1056 = vsyncpa [#allocation8 + $0x1], 1 }
 0x3f3   :  { %1057 = vsyncpa [#allocation9], 1 }
 0x3f4   :  { %1059 = vsyncpa [#allocation9 + $0x1], 1 }

</bundles_post_ra>
